<compile_context>
chip_gen: v5e
topology: v5e:2x2
jax: 0.10.0
libtpu: 0.0.40
codegen_flags: <defaults>
</compile_context>

<pallas_src>
import functools

import jax
import jax.numpy as jnp
from jax import lax
from jax.experimental import pallas as pl
from jax.experimental.pallas import tpu as pltpu


def _silu1d_kernel(x_ref, w_ref, b_ref, o_ref, *, kernel_size, dilation, padding):
    # x_ref: (1, C_in, T)        one batch element, NCT (time on lanes)
    # w_ref: (C_out, K * C_in)   column k*C_in + ci holds weight[:, ci, k]
    # b_ref: (C_out, 1)          bias
    # o_ref: (1, C_out, T_full)  stride-1 conv output (time on lanes)
    c_in = x_ref.shape[1]
    c_out = o_ref.shape[1]
    t_full = o_ref.shape[2]

    x = x_ref[0]  # (C_in, T)
    if padding > 0:
        # In-kernel zero padding along the lane (time) axis.
        zpad = jnp.zeros((c_in, padding), dtype=x.dtype)
        x = jnp.concatenate([zpad, x, zpad], axis=1)  # (C_in, T + 2*padding)

    w = w_ref[...].astype(jnp.float32)  # (C_out, K*C_in), loaded once
    acc = jnp.zeros((c_out, t_full), jnp.float32)

    # K * C_in broadcast FMAs on the VPU; K / C_in are static -> fully unrolled.
    for k in range(kernel_size):
        start = k * dilation
        xk = x[:, start:start + t_full].astype(jnp.float32)  # (C_in, T_full)
        for ci in range(c_in):
            j = k * c_in + ci
            w_col = w[:, j:j + 1]                  # (C_out, 1) sublane vector
            acc = acc + w_col * xk[ci:ci + 1, :]   # outer-product FMA (C_out, T_full)

    y = acc + b_ref[...].astype(jnp.float32)       # broadcast bias over lanes
    gated = y * jax.nn.sigmoid(y)                  # SiLU, all in f32
    o_ref[0] = gated.astype(o_ref.dtype)


def silu1d(x_nct, weight_oik, bias_o, *, stride=1, padding=0, dilation=1):
    """Conv1d + SiLU.

    x_nct: (B, C_in, T)  -- PyTorch NCT layout, kept as-is (lane-dense time).
    weight_oik: (C_out, C_in, K), bias_o: (C_out,).
    Returns (B, C_out, T_out) in NCT layout.
    """
    B, C_in, T = x_nct.shape
    C_out, _, K = weight_oik.shape
    T_full = T + 2 * padding - dilation * (K - 1)   # stride-1 conv output length
    T_out = (T_full - 1) // stride + 1              # PyTorch Conv1d output length

    # Tiny parameter reshuffles (negligible): weights -> (C_out, K*C_in) with
    # column index k*C_in + ci; bias -> (C_out, 1).
    w2d = jnp.transpose(weight_oik, (0, 2, 1)).reshape(C_out, K * C_in)
    b2d = bias_o.reshape(C_out, 1)

    kernel = functools.partial(
        _silu1d_kernel, kernel_size=K, dilation=dilation, padding=padding
    )

    out_full = pl.pallas_call(
        kernel,
        out_shape=jax.ShapeDtypeStruct((B, C_out, T_full), x_nct.dtype),
        grid_spec=pltpu.PrefetchScalarGridSpec(
            num_scalar_prefetch=0,
            grid=(B,),  # one batch element per grid step
            in_specs=[
                pl.BlockSpec((1, C_in, T), lambda b: (b, 0, 0)),
                pl.BlockSpec((C_out, K * C_in), lambda b: (0, 0)),
                pl.BlockSpec((C_out, 1), lambda b: (0, 0)),
            ],
            out_specs=pl.BlockSpec((1, C_out, T_full), lambda b: (b, 0, 0)),
        ),
        compiler_params=pltpu.CompilerParams(
            dimension_semantics=("parallel",),
        ),
    )(x_nct, w2d, b2d)

    if stride == 1:
        return out_full
    # stride > 1: a strided conv is the decimation of the stride-1 conv, and
    # SiLU is elementwise, so decimating the gated output is equivalent.
    return out_full[:, :, ::stride][:, :, :T_out]


def _reference(x_nct, weight_oik, bias_o, *, stride, padding, dilation):
    y = lax.conv_general_dilated(
        x_nct.astype(jnp.float32),
        weight_oik.astype(jnp.float32),
        window_strides=(stride,),
        padding=[(padding, padding)],
        rhs_dilation=(dilation,),
        dimension_numbers=("NCH", "OIH", "NCH"),
    ) + bias_o.reshape(1, -1, 1)
    return y * jax.nn.sigmoid(y)


if __name__ == "__main__":
    # Module config: SiLU1d(in_channels=4, out_channels=8, kernel_size=3,
    #                       stride=1, padding=1)
    B, C_in, C_out, T, K = 2, 4, 8, 16, 3
    stride, padding, dilation = 1, 1, 1

    key = jax.random.PRNGKey(0)
    kx, kw, kb = jax.random.split(key, 3)

    x = jax.random.normal(kx, (B, C_in, T), dtype=jnp.float32)

    # Deterministic Conv1d-style init: U(-sqrt(k), sqrt(k)), k = 1/(C_in*K)
    bound = (1.0 / (C_in * K)) ** 0.5
    weight = jax.random.uniform(kw, (C_out, C_in, K), jnp.float32, -bound, bound)
    bias = jax.random.uniform(kb, (C_out,), jnp.float32, -bound, bound)

    out = silu1d(x, weight, bias, stride=stride, padding=padding, dilation=dilation)
    out = jax.block_until_ready(out)

    ref = _reference(x, weight, bias, stride=stride, padding=padding, dilation=dilation)
    T_out = (T + 2 * padding - dilation * (K - 1) - 1) // stride + 1
    assert out.shape == (B, C_out, T_out)
    assert jnp.allclose(out, ref, atol=1e-5, rtol=1e-5), "mismatch vs reference conv+silu"

    print("KERNEL_OK")
</pallas_src>

<mosaic_0001>
module attributes {stable_mosaic.version = 11 : i64} {
  func.func @_silu1d_kernel(%arg0: i32, %arg1: memref<1x4x16xf32, #tpu.memory_space<vmem>>, %arg2: memref<8x12xf32, #tpu.memory_space<vmem>>, %arg3: memref<8x1xf32, #tpu.memory_space<vmem>>, %arg4: memref<1x8x16xf32, #tpu.memory_space<vmem>>) attributes {dimension_semantics = [#tpu.dimension_semantics<parallel>], iteration_bounds = array<i64: 2>, scalar_prefetch = 0 : i64, scratch_operands = 0 : i64, tpu.core_type = #tpu.core_type<tc>, window_params = [{transform_indices = @transform_0, window_bounds = array<i64: 1, 4, 16>}, {pipeline_mode = #tpu.pipeline_mode<synchronous>, transform_indices = @transform_1, window_bounds = array<i64: 8, 12>}, {pipeline_mode = #tpu.pipeline_mode<synchronous>, transform_indices = @transform_2, window_bounds = array<i64: 8, 1>}, {transform_indices = @transform_3, window_bounds = array<i64: 1, 8, 16>}]} {
    %c0 = arith.constant 0 : index
    %c0_0 = arith.constant 0 : index
    %c0_1 = arith.constant 0 : index
    %0 = vector.load %arg1[%c0, %c0_0, %c0_1] : memref<1x4x16xf32, #tpu.memory_space<vmem>>, vector<1x4x16xf32>
    %1 = vector.shape_cast %0 : vector<1x4x16xf32> to vector<4x16xf32>
    %cst = arith.constant 0.000000e+00 : f32
    %2 = vector.broadcast %cst : f32 to vector<4x1xf32>
    %3 = tpu.concatenate %2, %1, %2 in 1 : vector<4x1xf32>, vector<4x16xf32>, vector<4x1xf32> -> vector<4x18xf32>
    %c0_2 = arith.constant 0 : index
    %c0_3 = arith.constant 0 : index
    %4 = vector.load %arg2[%c0_2, %c0_3] : memref<8x12xf32, #tpu.memory_space<vmem>>, vector<8x12xf32>
    %cst_4 = arith.constant 0.000000e+00 : f32
    %5 = vector.broadcast %cst_4 : f32 to vector<8x16xf32>
    %6 = vector.extract_strided_slice %3 {offsets = [0, 0], sizes = [4, 16], strides = [1, 1]} : vector<4x18xf32> to vector<4x16xf32>
    %7 = vector.extract_strided_slice %4 {offsets = [0, 0], sizes = [8, 1], strides = [1, 1]} : vector<8x12xf32> to vector<8x1xf32>
    %8 = vector.extract_strided_slice %6 {offsets = [0, 0], sizes = [1, 16], strides = [1, 1]} : vector<4x16xf32> to vector<1x16xf32>
    %9 = vector.broadcast %7 : vector<8x1xf32> to vector<8x16xf32>
    %10 = vector.broadcast %8 : vector<1x16xf32> to vector<8x16xf32>
    %11 = arith.mulf %9, %10 : vector<8x16xf32>
    %12 = arith.addf %5, %11 : vector<8x16xf32>
    %13 = vector.extract_strided_slice %4 {offsets = [0, 1], sizes = [8, 1], strides = [1, 1]} : vector<8x12xf32> to vector<8x1xf32>
    %14 = vector.extract_strided_slice %6 {offsets = [1, 0], sizes = [1, 16], strides = [1, 1]} : vector<4x16xf32> to vector<1x16xf32>
    %15 = vector.broadcast %13 : vector<8x1xf32> to vector<8x16xf32>
    %16 = vector.broadcast %14 : vector<1x16xf32> to vector<8x16xf32>
    %17 = arith.mulf %15, %16 : vector<8x16xf32>
    %18 = arith.addf %12, %17 : vector<8x16xf32>
    %19 = vector.extract_strided_slice %4 {offsets = [0, 2], sizes = [8, 1], strides = [1, 1]} : vector<8x12xf32> to vector<8x1xf32>
    %20 = vector.extract_strided_slice %6 {offsets = [2, 0], sizes = [1, 16], strides = [1, 1]} : vector<4x16xf32> to vector<1x16xf32>
    %21 = vector.broadcast %19 : vector<8x1xf32> to vector<8x16xf32>
    %22 = vector.broadcast %20 : vector<1x16xf32> to vector<8x16xf32>
    %23 = arith.mulf %21, %22 : vector<8x16xf32>
    %24 = arith.addf %18, %23 : vector<8x16xf32>
    %25 = vector.extract_strided_slice %4 {offsets = [0, 3], sizes = [8, 1], strides = [1, 1]} : vector<8x12xf32> to vector<8x1xf32>
    %26 = vector.extract_strided_slice %6 {offsets = [3, 0], sizes = [1, 16], strides = [1, 1]} : vector<4x16xf32> to vector<1x16xf32>
    %27 = vector.broadcast %25 : vector<8x1xf32> to vector<8x16xf32>
    %28 = vector.broadcast %26 : vector<1x16xf32> to vector<8x16xf32>
    %29 = arith.mulf %27, %28 : vector<8x16xf32>
    %30 = arith.addf %24, %29 : vector<8x16xf32>
    %31 = vector.extract_strided_slice %3 {offsets = [0, 1], sizes = [4, 16], strides = [1, 1]} : vector<4x18xf32> to vector<4x16xf32>
    %32 = vector.extract_strided_slice %4 {offsets = [0, 4], sizes = [8, 1], strides = [1, 1]} : vector<8x12xf32> to vector<8x1xf32>
    %33 = vector.extract_strided_slice %31 {offsets = [0, 0], sizes = [1, 16], strides = [1, 1]} : vector<4x16xf32> to vector<1x16xf32>
    %34 = vector.broadcast %32 : vector<8x1xf32> to vector<8x16xf32>
    %35 = vector.broadcast %33 : vector<1x16xf32> to vector<8x16xf32>
    %36 = arith.mulf %34, %35 : vector<8x16xf32>
    %37 = arith.addf %30, %36 : vector<8x16xf32>
    %38 = vector.extract_strided_slice %4 {offsets = [0, 5], sizes = [8, 1], strides = [1, 1]} : vector<8x12xf32> to vector<8x1xf32>
    %39 = vector.extract_strided_slice %31 {offsets = [1, 0], sizes = [1, 16], strides = [1, 1]} : vector<4x16xf32> to vector<1x16xf32>
    %40 = vector.broadcast %38 : vector<8x1xf32> to vector<8x16xf32>
    %41 = vector.broadcast %39 : vector<1x16xf32> to vector<8x16xf32>
    %42 = arith.mulf %40, %41 : vector<8x16xf32>
    %43 = arith.addf %37, %42 : vector<8x16xf32>
    %44 = vector.extract_strided_slice %4 {offsets = [0, 6], sizes = [8, 1], strides = [1, 1]} : vector<8x12xf32> to vector<8x1xf32>
    %45 = vector.extract_strided_slice %31 {offsets = [2, 0], sizes = [1, 16], strides = [1, 1]} : vector<4x16xf32> to vector<1x16xf32>
    %46 = vector.broadcast %44 : vector<8x1xf32> to vector<8x16xf32>
    %47 = vector.broadcast %45 : vector<1x16xf32> to vector<8x16xf32>
    %48 = arith.mulf %46, %47 : vector<8x16xf32>
    %49 = arith.addf %43, %48 : vector<8x16xf32>
    %50 = vector.extract_strided_slice %4 {offsets = [0, 7], sizes = [8, 1], strides = [1, 1]} : vector<8x12xf32> to vector<8x1xf32>
    %51 = vector.extract_strided_slice %31 {offsets = [3, 0], sizes = [1, 16], strides = [1, 1]} : vector<4x16xf32> to vector<1x16xf32>
    %52 = vector.broadcast %50 : vector<8x1xf32> to vector<8x16xf32>
    %53 = vector.broadcast %51 : vector<1x16xf32> to vector<8x16xf32>
    %54 = arith.mulf %52, %53 : vector<8x16xf32>
    %55 = arith.addf %49, %54 : vector<8x16xf32>
    %56 = vector.extract_strided_slice %3 {offsets = [0, 2], sizes = [4, 16], strides = [1, 1]} : vector<4x18xf32> to vector<4x16xf32>
    %57 = vector.extract_strided_slice %4 {offsets = [0, 8], sizes = [8, 1], strides = [1, 1]} : vector<8x12xf32> to vector<8x1xf32>
    %58 = vector.extract_strided_slice %56 {offsets = [0, 0], sizes = [1, 16], strides = [1, 1]} : vector<4x16xf32> to vector<1x16xf32>
    %59 = vector.broadcast %57 : vector<8x1xf32> to vector<8x16xf32>
    %60 = vector.broadcast %58 : vector<1x16xf32> to vector<8x16xf32>
    %61 = arith.mulf %59, %60 : vector<8x16xf32>
    %62 = arith.addf %55, %61 : vector<8x16xf32>
    %63 = vector.extract_strided_slice %4 {offsets = [0, 9], sizes = [8, 1], strides = [1, 1]} : vector<8x12xf32> to vector<8x1xf32>
    %64 = vector.extract_strided_slice %56 {offsets = [1, 0], sizes = [1, 16], strides = [1, 1]} : vector<4x16xf32> to vector<1x16xf32>
    %65 = vector.broadcast %63 : vector<8x1xf32> to vector<8x16xf32>
    %66 = vector.broadcast %64 : vector<1x16xf32> to vector<8x16xf32>
    %67 = arith.mulf %65, %66 : vector<8x16xf32>
    %68 = arith.addf %62, %67 : vector<8x16xf32>
    %69 = vector.extract_strided_slice %4 {offsets = [0, 10], sizes = [8, 1], strides = [1, 1]} : vector<8x12xf32> to vector<8x1xf32>
    %70 = vector.extract_strided_slice %56 {offsets = [2, 0], sizes = [1, 16], strides = [1, 1]} : vector<4x16xf32> to vector<1x16xf32>
    %71 = vector.broadcast %69 : vector<8x1xf32> to vector<8x16xf32>
    %72 = vector.broadcast %70 : vector<1x16xf32> to vector<8x16xf32>
    %73 = arith.mulf %71, %72 : vector<8x16xf32>
    %74 = arith.addf %68, %73 : vector<8x16xf32>
    %75 = vector.extract_strided_slice %4 {offsets = [0, 11], sizes = [8, 1], strides = [1, 1]} : vector<8x12xf32> to vector<8x1xf32>
    %76 = vector.extract_strided_slice %56 {offsets = [3, 0], sizes = [1, 16], strides = [1, 1]} : vector<4x16xf32> to vector<1x16xf32>
    %77 = vector.broadcast %75 : vector<8x1xf32> to vector<8x16xf32>
    %78 = vector.broadcast %76 : vector<1x16xf32> to vector<8x16xf32>
    %79 = arith.mulf %77, %78 : vector<8x16xf32>
    %80 = arith.addf %74, %79 : vector<8x16xf32>
    %c0_5 = arith.constant 0 : index
    %c0_6 = arith.constant 0 : index
    %81 = vector.load %arg3[%c0_5, %c0_6] : memref<8x1xf32, #tpu.memory_space<vmem>>, vector<8x1xf32>
    %82 = vector.broadcast %81 : vector<8x1xf32> to vector<8x16xf32>
    %83 = arith.addf %80, %82 : vector<8x16xf32>
    %84 = arith.negf %83 : vector<8x16xf32>
    %85 = math.exp %84 : vector<8x16xf32>
    %cst_7 = arith.constant 1.000000e+00 : f32
    %86 = vector.broadcast %cst_7 : f32 to vector<8x16xf32>
    %87 = arith.addf %86, %85 : vector<8x16xf32>
    %88 = arith.divf %86, %87 : vector<8x16xf32>
    %89 = arith.mulf %83, %88 : vector<8x16xf32>
    %c0_8 = arith.constant 0 : index
    %c0_9 = arith.constant 0 : index
    %c0_10 = arith.constant 0 : index
    %90 = vector.load %arg4[%c0_8, %c0_9, %c0_10] : memref<1x8x16xf32, #tpu.memory_space<vmem>>, vector<1x8x16xf32>
    %91 = vector.shape_cast %90 : vector<1x8x16xf32> to vector<8x16xf32>
    %92 = vector.shape_cast %89 : vector<8x16xf32> to vector<1x8x16xf32>
    tpu.vector_store %arg4[%c0_8, %c0_9, %c0_10], %92 {strides = array<i32>} : memref<1x8x16xf32, #tpu.memory_space<vmem>>, vector<1x8x16xf32>,
    return
  }
  func.func @transform_0(%arg0: i32) -> (i32, i32, i32) {
    %c0_i32 = arith.constant 0 : i32
    %c0_i32_0 = arith.constant 0 : i32
    %c0_i32_1 = arith.constant 0 : i32
    return %arg0, %c0_i32, %c0_i32_0 : i32, i32, i32
  }
  func.func @transform_1(%arg0: i32) -> (i32, i32) {
    %c0_i32 = arith.constant 0 : i32
    %c0_i32_0 = arith.constant 0 : i32
    %c0_i32_1 = arith.constant 0 : i32
    return %c0_i32, %c0_i32_0 : i32, i32
  }
  func.func @transform_2(%arg0: i32) -> (i32, i32) {
    %c0_i32 = arith.constant 0 : i32
    %c0_i32_0 = arith.constant 0 : i32
    %c0_i32_1 = arith.constant 0 : i32
    return %c0_i32, %c0_i32_0 : i32, i32
  }
  func.func @transform_3(%arg0: i32) -> (i32, i32, i32) {
    %c0_i32 = arith.constant 0 : i32
    %c0_i32_0 = arith.constant 0 : i32
    %c0_i32_1 = arith.constant 0 : i32
    return %arg0, %c0_i32, %c0_i32_0 : i32, i32, i32
  }
}

</mosaic_0001>

<bundles_post_ra>
// kernel: tpu_custom_call.1
= control target key start
LH: loop header
LB: loop body
LE: loop exit
PB: predicated region body
PF: predicated region fallthrough
CT: control target
= control target key end

     0   :  { %8 = vsyncpa [#allocation3], 0  ;;  %s738_s0 = inlined_call_operand.vmem [shape: f32[2,4,16], index: 0, kind: input, shape index: {}]   ;;  %s739_s1 = inlined_call_operand.hbm [shape: f32[8,12], index: 1, kind: input, shape index: {}]   ;;  %s740_s2 = inlined_call_operand.vmem [shape: f32[8,1], index: 2, kind: input, shape index: {}]   ;;  %s741_s3 = inlined_call_operand.hbm [shape: f32[2,8,16], index: 3, kind: output, shape index: {}]  }
   0x1   :  { %9 = vsyncpa [#allocation4], 0 }
   0x2   :  { %11 = vsyncpa [#allocation4 + $0x1], 0  ;;  %s646_s12 = smov 0   ;;  %s648_s13 = smov 0  }
   0x3   :  { %s650_s14 = smov 0   ;;  %s652_s15 = smov 0  }
   0x4 LB: > { %s667_s16 = sadd.s32 4294967295, %s608_s15   ;;  %s416_s17 = sadd.s32 4294967294, %s608_s15   ;;  %s608_s15 = sphi %s652_s15, %s747_s15   ;;  %s604_s14 = sphi %s650_s14, %s746_s14   ;;  %s600_s13 = sphi %s648_s13, %s745_s13   ;;  %s596_s12 = sphi %s646_s12, %s744_s12  }
   0x5   : > { %s671_s18 = sadd.s32 1, %s608_s15   ;;  %s92_s19 = sadd.s32 1, %s604_s14 }
   0x6   : > { %s89_s20 = ssub.s32 %s608_s15, %s671_s18  ;;  %p102_p0 = scmp.ne.s32.totalorder %s604_s14, %s600_s13 }
   0x7   : > { %p90_p1 = scmp.eq.s32.totalorder %s89_s20, 0  ;;  %p103_p2 = scmp.eq.s32.totalorder %s667_s16, 1 }
   0x8   : > { %p108_p3 = scmp.ne.s32.totalorder %s600_s13, %s596_s12  ;;  %p109_p4 = scmp.eq.s32.totalorder %s416_s17, 1 }
   0x9   : > { %s682_s21 = scalar_select %p90_p1, %s604_s14, %s92_s19  }
   0xa   : > { %p684_p5 = por %p103_p2, %p102_p0  ;;  %p688_p6 = por %p109_p4, %p108_p3 }
   0xb   : > { %p417_p7 = scmp.ge.s32.totalorder %s608_s15, 1  ;;  %p116_p8 = scmp.lt.s32.totalorder %s608_s15, 3 }
   0xc   : > { %p443_p9 = scmp.eq.s32.totalorder %s667_s16, 0  ;;  %s128_s26 = sshll.u32 %s739_s1, 4  ;;  %s129_s26 = int_to_ptr.hbm [resolvable:$true] %s128_s26 }
   0xd   : > { %p117_p10 = pnand %p417_p7, %p116_p8  ;;  %s610_s27 = smov [#allocation2]  }
   0xe   : > { %s130_s28 = sshll.u32 %s610_s27, 4  ;;  %s131_s28 = int_to_ptr.vmem [resolvable:$true] %s130_s28 }
   0xf   : > { %p435_p11 = pneg %p117_p10  ;;  %153 = sbr.rel (%p117_p10) target bundleno = 323 (0x143), region = 32 }
  0x11   : > { %p436_p12 = pnand %p443_p9, %p435_p11 }
  0x13   : > { %438 = dma.hbm_to_vmem [thread:$0]  (!%p436_p12), %s129_s26, 128, %s131_s28, [#allocation3]  }
  0x14   : > { %587 = dma.done.wait (%p443_p9), [#allocation3], 128  }
  0x15   : > { %589 = vsyncadd (%p443_p9), [#allocation3], 4294967168  ;;  %p177_p13 = scmp.lt.s32.totalorder %s667_s16, 1  ;;  %v611_v0 = vmov 7   ;;  %v612_v1 = vmov 5   ;;  %v613_v2 = vmov 4  }
  0x16   : > { %497 = vset.pattern.permute.xlu2 %v611_v0  ;;  %495 = vset.pattern.permute.xlu1 %v612_v1  ;;  %v190_v3 = vld [vmem:[#allocation2] sm:$0xff]  ;;  %s614_s7 = smov 1   ;;  %v615_v5 = vmov 8   ;;  %v616_v6 = vmov 6   ;;  %v617_v7 = vmov 11   ;;  %v618_v8 = vmov 10  }
  0x17   : > { %s178_s29 = scalar_select %p177_p13, %s667_s16, 1  ;;  %494 = vset.pattern.permute.xlu0 %v613_v2  ;;  %251 = vperm.xlu2 %497, %v190_v3   ;;  %v619_v9 = vmov 9   ;;  %v620_v10 = vmov 0   ;;  %v621_v11 = vmov 1   ;;  %v622_v12 = vmov 3   ;;  %v300_v38 = vld [vmem:[%s740_s2] sm:$0xff] }
  0x18   : > { %231 = vperm.xlu1 %495, %v190_v3   ;;  %v623_v13 = vmov 2   ;;  %vm186_vm0 = vcmask 7168   ;;  %vm188_vm1 = vcmask 138240   ;;  %s624_s8 = smov 127   ;;  %s625_s9 = smov 126   ;;  %vm327_vm6 = vcmask 130048  }
  0x19   : > { %s423_s30 = sshll.u32 %s178_s29, 2  ;;  %s174_s17 = sand.u32 1, %s600_s13  }
  0x1a   : > { %s180_s6 = scalar_lea.vmem %s738_s0, %s423_s30  ;;  %s422_s19 = sshll.u32 %s174_s17, 3 }
  0x1b   : > { %v181_v4 = vld [vmem:[%s180_s6] sm:$0xf]  ;;  %s426_s20 = sshll.u32 %s667_s16, 3  ;;  %s176_s27 = scalar_lea.vmem [#allocation5], %s422_s19 }
  0x1c   : > { %183 = vrot.lane.b32.xlu0 %v181_v4, %s614_s7  ;;  %s340_s26 = scalar_lea.hbm %s741_s3, %s426_s20  ;;  %s342_s28 = sshll.u32 %s176_s27, 4  ;;  %s343_s28 = int_to_ptr.vmem [resolvable:$true] %s342_s28 }
  0x1d   : > { %s344_s29 = sshll.u32 %s340_s26, 4  ;;  %s330_s16 = scalar_lea.sflag [#allocation4], %s174_s17  ;;  %s345_s29 = int_to_ptr.hbm [resolvable:$true] %s344_s29 }
  0x1e   : > { %s556_s30 = sshra.s32 %s345_s29, 4  ;;  %s562_s7 = scalar_lea.hbm %s741_s3, 16  ;;  %s557_s30 = int_to_ptr.hbm [resolvable:$true] %s556_s30 }
  0x1f   : > { %498 = vset.pattern.permute.xlu2 %v615_v5  ;;  %s558_s4 = scalar_lea.hbm %s557_s30, 8  ;;  %p563_p3 = scmp.lt.s32.totalorder %s557_s30, %s741_s3 }
  0x20   : > { %496 = vset.pattern.permute.xlu1 %v616_v6  ;;  %261 = vperm.xlu2 %498, %v190_v3   ;;  %p559_p0 = scmp.ne.s32.totalorder %s557_s30, %s558_s4  ;;  %p564_p4 = scmp.lt.s32.totalorder %s562_s7, %s558_s4 }
  0x21   : > { %241 = vperm.xlu1 %496, %v190_v3  }
  0x22   : > { %p560_p1 = pnand %p559_p0, %p684_p5  ;;  %p565_p7 = por %p564_p4, %p563_p3 }
  0x24   : > { %221 = vperm.xlu0 %494, %v190_v3   ;;  %p561_p2 = pneg %p560_p1 }
  0x26   : > { %p566_p8 = pnand %p565_p7, %p561_p2 }
  0x28   : > { %500 = vset.pattern.permute.xlu2 %v618_v8 }
  0x29   : > { %499 = vset.pattern.permute.xlu1 %v619_v9  ;;  %281 = vperm.xlu2 %500, %v190_v3  }
  0x2a   : > { %271 = vperm.xlu1 %499, %v190_v3  }
  0x2c   : > { %501 = vset.pattern.permute.xlu0 %v617_v7 }
  0x2d   : > { %291 = vperm.xlu0 %501, %v190_v3  }
  0x31   : > { %503 = vset.pattern.permute.xlu2 %v621_v11 }
  0x32   : > { %502 = vset.pattern.permute.xlu1 %v620_v10  ;;  %200 = vperm.xlu2 %503, %v190_v3  }
  0x33   : > { %193 = vperm.xlu1 %502, %v190_v3  }
  0x35   : > { %507 = vset.pattern.permute.xlu0 %v620_v10 }
  0x3a   : > { %505 = vset.pattern.permute.xlu2 %v622_v12 }
  0x3b   : > { %504 = vset.pattern.permute.xlu1 %v623_v13  ;;  %214 = vperm.xlu2 %505, %v190_v3  }
  0x3c   : > { %207 = vperm.xlu1 %504, %v190_v3  }
  0x43   : > { %506 = vset.pattern.permute.xlu2 %v620_v10 }
  0x71   : > { %v252_v14 = vpop.permute.xlu2 %251 }
  0x7a   : > { %v262_v20 = vpop.permute.xlu2 %261 }
  0x83   : > { %v282_v30 = vpop.permute.xlu2 %281 }
  0x8a   : > { %v232_v15 = vpop.permute.xlu1 %231 }
  0x8c   : > { %v201_v36 = vpop.permute.xlu2 %200 }
  0x8e   : > { %v184_v16 = vpop.permute.xlu0 %183 }
  0x8f   : > { %v187_v17 = vsel %vm186_vm0, 0.0, %v184_v16 }
  0x90   : > { %v189_v18 = vsel %vm188_vm1, %v187_v17, 0.0 }
  0x91   : > { %v203_v19 = vperm.slane %v189_v18, 1  ;;  %v196_v22 = vperm.slane %v189_v18, 0  ;;  %v210_v24 = vperm.slane %v189_v18, 2  ;;  %v217_v28 = vperm.slane %v189_v18, 3 }
  0x93   : > { %v234_v21 = vmul.f32 %v232_v15, %v203_v19  ;;  %v242_v26 = vpop.permute.xlu1 %241  ;;  %v264_v29 = vmul.f32 %v262_v20, %v196_v22  ;;  %v254_v31 = vmul.f32 %v252_v14, %v217_v28  ;;  %v284_v37 = vmul.f32 %v282_v30, %v210_v24 }
  0x94   : > { %v244_v27 = vmul.f32 %v242_v26, %v210_v24  ;;  %v204_v40 = vmul.f32 %v203_v19, %v201_v36 }
  0x95   : > { %236 = vrot.lane.b32.xlu1 %v234_v21, %s624_s8  ;;  %v215_v43 = vpop.permute.xlu2 %214 }
  0x96   : > { %v222_v23 = vpop.permute.xlu0 %221  ;;  %246 = vrot.lane.b32.xlu2 %v244_v27, %s624_s8  ;;  %v218_v46 = vmul.f32 %v217_v28, %v215_v43 }
  0x97   : > { %v224_v25 = vmul.f32 %v222_v23, %v196_v22 }
  0x99   : > { %226 = vrot.lane.b32.xlu0 %v224_v25, %s624_s8 }
  0x9c   : > { %v272_v33 = vpop.permute.xlu1 %271 }
  0x9d   : > { %266 = vrot.lane.b32.xlu1 %v264_v29, %s625_s9  ;;  %v274_v34 = vmul.f32 %v272_v33, %v203_v19 }
  0x9f   : > { %v292_v32 = vpop.permute.xlu0 %291  ;;  %276 = vrot.lane.b32.xlu2 %v274_v34, %s625_s9 }
  0xa0   : > { %v294_v35 = vmul.f32 %v292_v32, %v217_v28 }
  0xa1   : > { %256 = vrot.lane.b32.xlu0 %v254_v31, %s624_s8 }
  0xa5   : > { %296 = vrot.lane.b32.xlu1 %v294_v35, %s625_s9  ;;  %v194_v39 = vpop.permute.xlu1 %193 }
  0xa6   : > { %v197_v41 = vmul.f32 %v196_v22, %v194_v39 }
  0xa7   : > { %303 = vperm.xlu2 %506, %v300_v38  }
  0xa8   : > { %v205_v42 = vadd.f32 %v204_v40, %v197_v41 }
  0xa9   : > { %286 = vrot.lane.b32.xlu0 %v284_v37, %s625_s9 }
  0xae   : > { %v208_v44 = vpop.permute.xlu1 %207 }
  0xaf   : > { %v211_v45 = vmul.f32 %v210_v24, %v208_v44 }
  0xb1   : > { %v212_v47 = vadd.f32 %v211_v45, %v205_v42 }
  0xb3   : > { %v219_v48 = vadd.f32 %v218_v46, %v212_v47 }
  0xf0   : > { %v247_v50 = vpop.permute.xlu2 %246 }
  0xf9   : > { %v277_v58 = vpop.permute.xlu2 %276 }
 0x101   : > { %v304_v0 = vpop.permute.xlu2 %303 }
 0x107   : > { %v237_v49 = vpop.permute.xlu1 %236 }
 0x10b   : > { %v227_v51 = vpop.permute.xlu0 %226 }
 0x10c   : > { %v229_v52 = vadd.f32 %v227_v51, %v219_v48 }
 0x10e   : > { %v239_v53 = vadd.f32 %v237_v49, %v229_v52 }
 0x10f   : > { %v267_v55 = vpop.permute.xlu1 %266 }
 0x110   : > { %v249_v54 = vadd.f32 %v247_v50, %v239_v53 }
 0x113   : > { %v257_v56 = vpop.permute.xlu0 %256 }
 0x114   : > { %v259_v57 = vadd.f32 %v257_v56, %v249_v54 }
 0x116   : > { %v269_v59 = vadd.f32 %v267_v55, %v259_v57 }
 0x117   : > { %v297_v63 = vpop.permute.xlu1 %296 }
 0x118   : > { %v279_v60 = vadd.f32 %v277_v58, %v269_v59 }
 0x11b   : > { %v287_v61 = vpop.permute.xlu0 %286 }
 0x11c   : > { %v289_v62 = vadd.f32 %v287_v61, %v279_v60 }
 0x11e   : > { %v299_v1 = vadd.f32 %v297_v63, %v289_v62 }
 0x120   : > { %v306_v2 = vadd.f32 %v304_v0, %v299_v1 }
 0x122   : > { %v424_v3 = vmul.f32 -1.442695, %v306_v2 }
 0x124   : > { %508 = vpow2.f32 %v424_v3 }
 0x12a   : > { %v509_v4 = vpop.eup %508 }
 0x12b   : > { %v310_v5 = vadd.f32 1.0, %v509_v4 }
 0x12d   : > { %510 = vrcp.f32 %v310_v5  ;;  %v322_v9 = vand.u32 2147483648, %v310_v5  ;;  %v320_v11 = vand.u32 2147483647, %v310_v5  ;;  %vm316_vm3 = vweird.f32 %v310_v5 }
 0x12f   : > { %v323_v13 = vor.u32 1.1754944e-38, %v322_v9  ;;  %vm321_vm5 = vcmp.eq.f32.partialorder %v320_v11, 8.507059e+37 }
 0x133   : > { %v511_v6 = vpop.eup %510 }
 0x134   : > { %v312_v7 = vmul.f32 %v511_v6, %v310_v5  ;;  %vm317_vm2 = vweird.f32 %v511_v6 }
 0x135   : > { %vm318_vm4 = vmor %vm316_vm3, %vm317_vm2 }
 0x136   : > { %v313_v8 = vsub.f32 1.0, %v312_v7 }
 0x138   : > { %v314_v10 = vmul.f32 %v511_v6, %v313_v8 }
 0x13a   : > { %v315_v12 = vadd.f32 %v511_v6, %v314_v10 }
 0x13c   : > { %v319_v14 = vsel %vm318_vm4, %v511_v6, %v315_v12 }
 0x13d   : > { %v324_v15 = vsel %vm321_vm5, %v323_v13, %v319_v14 }
 0x13e   : > { %v326_v16 = vmul.f32 %v324_v15, %v306_v2 }
 0x140   : > { %328 = vst.msk [vmem:[%s176_s27] sm:$0xff] %vm327_vm6, %v326_v16 }
 0x141   : > { %569 = shalt.err (!%p566_p8)
}
 0x142   : > { %433 = dma.vmem_to_hbm [thread:$0]  (%p684_p5), %s343_s28, 128, %s345_s29, %s330_s16  }
 0x143 PF: > { %p445_p9 = scmp.ge.s32.totalorder %s608_s15, 2  ;;  %s356_s10 = sand.u32 1, %s596_s12  }
 0x144   : > { %s357_s11 = scalar_lea.sflag [#allocation4], %s356_s10 }
 0x145   : > { %p440_p10 = pnand %p445_p9, %p688_p6 }
 0x147   : > { %p441_p11 = pneg %p440_p10 }
 0x149   : > { %591 = dma.done.wait (%p441_p11), %s357_s11, 128  }
 0x14a   : > { %593 = vsyncadd (%p441_p11), %s357_s11, 4294967168  ;;  %p14_p12 = scmp.ge.s32.totalorder %s671_s18, 4   ;;  %s744_s12 = smov %s600_s13 }
 0x14b   : > { %s745_s13 = smov %s604_s14  ;;  %s746_s14 = smov %s682_s21 }
 0x14c   : > { %s747_s15 = smov %s671_s18  ;;  %16 = sbr.rel (!%p14_p12) target bundleno = 4 (0x4), region = 72 }
 0x151   :  { %363 = vsyncpa [#allocation3], 1 }
 0x152   :  { %365 = vsyncpa [#allocation3 + $0x1], 1 }
 0x153   :  { %366 = vsyncpa [#allocation4], 1 }
 0x154   :  { %368 = vsyncpa [#allocation4 + $0x1], 1 }

</bundles_post_ra>
